<compile_context>
chip_gen: v6e
topology: v6e:2x2x1
jax: 0.10.0
libtpu: 0.0.40
codegen_flags: <defaults>
</compile_context>

<pallas_src>
import functools

import jax
import jax.numpy as jnp
from jax.experimental import pallas as pl
from jax.experimental.pallas import tpu as pltpu


def _apply_act(acc, act_type):
    if act_type == "hardsigmoid":
        # torch.nn.Hardsigmoid: clip(x/6 + 1/2, 0, 1). Multiply (VALU), not divide.
        return jnp.clip(acc * (1.0 / 6.0) + 0.5, 0.0, 1.0)
    elif act_type == "sigmoid":
        return jax.nn.sigmoid(acc)
    elif act_type == "relu":
        return jnp.maximum(acc, 0.0)
    raise ValueError(f"Unknown activation: {act_type}")


def _conv_act_kernel(x_ref, w_ref, b_ref, o_ref, *,
                     bt, kh_size, kw, ic, oc, tw, n_wtiles, act_type):
    """Bt images per grid step: conv as KH lane-dense matmuls + bias + activation.

    x_ref: (Bt, KH, Ho, Wp*IC)          KH-pre-shifted padded input (aligned rows)
    w_ref: (KH, (Tw+KW-1)*IC, Tw*OC)    banded weight, shared by every Wo tile
    b_ref: (1, Tw*OC)                   bias tiled across the Tw output positions
    o_ref: (Bt, Ho, Wo*OC)              lane-dense output block
    """
    ncol = (tw + kw - 1) * ic
    bias = b_ref[...].astype(jnp.float32)                        # (1, Tw*OC)
    for i in range(bt):                                          # static unroll: images
        for t in range(n_wtiles):                                # static unroll: Wo tiles
            col0 = t * tw * ic
            # Native-dtype MXU operands (bf16 in the demo); f32 accumulation only.
            acc = jnp.dot(x_ref[i, 0, :, col0:col0 + ncol], w_ref[0],
                          preferred_element_type=jnp.float32)
            for kh in range(1, kh_size):
                acc = acc + jnp.dot(x_ref[i, kh, :, col0:col0 + ncol], w_ref[kh],
                                    preferred_element_type=jnp.float32)
            acc = _apply_act(acc + bias, act_type)
            o_ref[i, :, t * tw * oc:(t + 1) * tw * oc] = acc.astype(o_ref.dtype)


def _pick_wo_tile(wo, oc):
    """Smallest divisor Tw of Wo with Tw*OC >= 128 (lane-dense output stores)."""
    for t in range(1, wo + 1):
        if wo % t == 0 and t * oc >= 128:
            return t
    return wo


def net_elemwise_act(x_nchw, w_oihw, bias=None, *, act_type,
                     stride=(1, 1), padding=(1, 1), dilation=(1, 1), groups=1):
    """Conv2d(stride=1, dilation=1, groups=1, optional bias) + activation, fused."""
    if isinstance(stride, int):
        stride = (stride, stride)
    if isinstance(padding, int):
        padding = (padding, padding)
    if isinstance(dilation, int):
        dilation = (dilation, dilation)
    if tuple(stride) != (1, 1) or tuple(dilation) != (1, 1) or groups != 1:
        raise NotImplementedError(
            "Pallas NetElemwiseAct kernel supports stride=1, dilation=1, groups=1 "
            f"only; got stride={stride}, dilation={dilation}, groups={groups}")

    act = act_type.lower()             # accepts 'Relu' / 'ReLU' / 'HardSigmoid' ...
    if act not in ("hardsigmoid", "sigmoid", "relu"):
        raise Exception(f"Unknown activation: {act_type}")

    B, IC, H, W = x_nchw.shape
    OC, IC_w, KH, KW = w_oihw.shape
    assert IC_w == IC, (IC_w, IC)
    ph, pw = padding
    Hp, Wp = H + 2 * ph, W + 2 * pw
    Ho, Wo = Hp - KH + 1, Wp - KW + 1
    dtype = x_nchw.dtype
    itemsize = jnp.dtype(dtype).itemsize
    if bias is None:
        bias = jnp.zeros((OC,), dtype)

    # ----- tiling choices ----------------------------------------------------
    Tw = _pick_wo_tile(Wo, OC)                 # Wo tile width (lane-dense Tw*OC)
    Wc = Tw + KW - 1                           # contraction window per Wo tile
    n_wtiles = Wo // Tw
    Bt = min(B, 8)                             # images per grid step
    B_pad = -(-B // Bt) * Bt                   # pad batch to a multiple of Bt

    # ----- wrapper-side layout plumbing (cheap, outside the hot loop) --------
    # NCHW -> NHWC, zero-pad the halo, flatten (W, IC) onto the lane axis, then
    # pre-shift along KH so every in-kernel LHS read is sublane-aligned.
    x_nhwc = jnp.transpose(x_nchw, (0, 2, 3, 1))
    x_pad = jnp.pad(x_nhwc, ((0, 0), (ph, ph), (pw, pw), (0, 0)))
    x_flat = x_pad.reshape(B, Hp, Wp * IC)
    x_shift = jnp.stack([x_flat[:, kh:kh + Ho, :] for kh in range(KH)], axis=1)
    if B_pad != B:
        x_shift = jnp.pad(x_shift, ((0, B_pad - B), (0, 0), (0, 0), (0, 0)))
    # x_shift: (B_pad, KH, Ho, Wp*IC)

    # Banded weight, built with one vectorized one-hot einsum:
    #   w_band[kh, c*IC+ic, w*OC+oc] = W[oc, ic, kh, c-w]  if 0 <= c-w < KW else 0
    w_f32 = jnp.transpose(w_oihw, (2, 3, 1, 0)).astype(jnp.float32)   # (KH, KW, IC, OC)
    c_idx = jnp.arange(Wc)[:, None, None]
    w_idx = jnp.arange(Tw)[None, :, None]
    k_idx = jnp.arange(KW)[None, None, :]
    sel = (c_idx == w_idx + k_idx).astype(jnp.float32)                # (Wc, Tw, KW)
    w_band = jnp.einsum("cwd,hdio->hciwo", sel, w_f32)                # (KH, Wc, IC, Tw, OC)
    w_band = w_band.reshape(KH, Wc * IC, Tw * OC).astype(dtype)

    b_tiled = jnp.tile(bias.astype(dtype), Tw).reshape(1, Tw * OC)

    kernel = functools.partial(
        _conv_act_kernel, bt=Bt, kh_size=KH, kw=KW, ic=IC, oc=OC,
        tw=Tw, n_wtiles=n_wtiles, act_type=act)

    out3 = pl.pallas_call(
        kernel,
        out_shape=jax.ShapeDtypeStruct((B_pad, Ho, Wo * OC), dtype),
        grid_spec=pltpu.PrefetchScalarGridSpec(
            num_scalar_prefetch=0,
            grid=(B_pad // Bt,),
            in_specs=[
                pl.BlockSpec((Bt, KH, Ho, Wp * IC), lambda b: (b, 0, 0, 0)),
                pl.BlockSpec((KH, Wc * IC, Tw * OC), lambda b: (0, 0, 0)),
                pl.BlockSpec((1, Tw * OC), lambda b: (0, 0)),
            ],
            out_specs=pl.BlockSpec((Bt, Ho, Wo * OC), lambda b: (b, 0, 0)),
        ),
        compiler_params=pltpu.CompilerParams(
            dimension_semantics=("parallel",),
            vmem_limit_bytes=32 * 1024 * 1024,
        ),
        cost_estimate=pl.CostEstimate(
            # Useful MACs only (banded weight removes the Toeplitz structural zeros).
            flops=2 * B * KH * KW * IC * Ho * Wo * OC,
            transcendentals=B * Ho * Wo * OC if act == "sigmoid" else 0,
            bytes_accessed=(x_shift.size + w_band.size + b_tiled.size
                            + B_pad * Ho * Wo * OC) * itemsize,
        ),
    )(x_shift, w_band, b_tiled)

    # Back to PyTorch's NCHW convention (pure layout work, outside the kernel).
    out3 = out3[:B]
    return jnp.transpose(out3.reshape(B, Ho, Wo, OC), (0, 3, 1, 2))


if __name__ == "__main__":
    # Small shapes consistent with the module (args.ic/oc/h/w/kh/kw/stride/pad).
    B, IC, H, W = 2, 4, 16, 16
    OC, KH, KW = 8, 3, 3
    PH, PW = 1, 1
    ACT = "HardSigmoid"
    dtype = jnp.bfloat16   # PyTorch module runs .half(); bf16 is the native MXU dtype.

    key = jax.random.PRNGKey(0)
    kx, kw_, kb = jax.random.split(key, 3)
    x = jax.random.normal(kx, (B, IC, H, W), jnp.float32).astype(dtype)
    w = (jax.random.normal(kw_, (OC, IC, KH, KW), jnp.float32) * 0.1).astype(dtype)
    b = (jax.random.normal(kb, (OC,), jnp.float32) * 0.1).astype(dtype)

    out = net_elemwise_act(x, w, b, act_type=ACT, stride=(1, 1), padding=(PH, PW))
    out = jax.block_until_ready(out)

    # Pure-JAX reference: same bf16 inputs, f32 accumulation, same activation.
    ref_conv = jax.lax.conv_general_dilated(
        x.astype(jnp.float32), w.astype(jnp.float32),
        window_strides=(1, 1), padding=((PH, PH), (PW, PW)),
        dimension_numbers=("NCHW", "OIHW", "NCHW"),
    ) + b.astype(jnp.float32)[None, :, None, None]
    ref = jnp.clip(ref_conv * (1.0 / 6.0) + 0.5, 0.0, 1.0)

    assert out.shape == (B, OC, H, W), out.shape
    err = float(jnp.max(jnp.abs(out.astype(jnp.float32) - ref)))
    assert err < 2e-2, err
    print("KERNEL_OK")
</pallas_src>

<mosaic_0001>
module attributes {stable_mosaic.version = 11 : i64} {
  func.func @_conv_act_kernel(%arg0: i32, %arg1: memref<2x3x16x72xbf16, #tpu.memory_space<vmem>>, %arg2: memref<3x72x128xbf16, #tpu.memory_space<vmem>>, %arg3: memref<1x128xbf16, #tpu.memory_space<vmem>>, %arg4: memref<2x16x128xbf16, #tpu.memory_space<vmem>>) attributes {dimension_semantics = [#tpu.dimension_semantics<parallel>], iteration_bounds = array<i64: 1>, scalar_prefetch = 0 : i64, scratch_operands = 0 : i64, tpu.core_type = #tpu.core_type<tc>, window_params = [{transform_indices = @transform_0, window_bounds = array<i64: 2, 3, 16, 72>}, {pipeline_mode = #tpu.pipeline_mode<synchronous>, transform_indices = @transform_1, window_bounds = array<i64: 3, 72, 128>}, {pipeline_mode = #tpu.pipeline_mode<synchronous>, transform_indices = @transform_2, window_bounds = array<i64: 1, 128>}, {transform_indices = @transform_3, window_bounds = array<i64: 2, 16, 128>}]} {
    %c0 = arith.constant 0 : index
    %c0_0 = arith.constant 0 : index
    %0 = vector.load %arg3[%c0, %c0_0] : memref<1x128xbf16, #tpu.memory_space<vmem>>, vector<1x128xbf16>
    %1 = arith.extf %0 : vector<1x128xbf16> to vector<1x128xf32>
    %c0_1 = arith.constant 0 : index
    %c0_2 = arith.constant 0 : index
    %c0_3 = arith.constant 0 : index
    %c0_4 = arith.constant 0 : index
    %2 = vector.load %arg1[%c0_1, %c0_2, %c0_3, %c0_4] : memref<2x3x16x72xbf16, #tpu.memory_space<vmem>>, vector<1x1x16x72xbf16>
    %3 = vector.shape_cast %2 : vector<1x1x16x72xbf16> to vector<16x72xbf16>
    %c0_5 = arith.constant 0 : index
    %c0_6 = arith.constant 0 : index
    %c0_7 = arith.constant 0 : index
    %4 = vector.load %arg2[%c0_5, %c0_6, %c0_7] : memref<3x72x128xbf16, #tpu.memory_space<vmem>>, vector<1x72x128xbf16>
    %5 = vector.shape_cast %4 : vector<1x72x128xbf16> to vector<72x128xbf16>
    %cst = arith.constant dense<0.000000e+00> : vector<16x128xf32>
    %6 = tpu.matmul %3, %5, %cst {dimension_numbers = #tpu.dot_dimension_numbers<[1], [0], [0], [1], [0, 0, 1, 1], [], []>} : vector<16x72xbf16>, vector<72x128xbf16>, vector<16x128xf32> -> vector<16x128xf32>
    %c0_8 = arith.constant 0 : index
    %c1 = arith.constant 1 : index
    %c0_9 = arith.constant 0 : index
    %c0_10 = arith.constant 0 : index
    %7 = vector.load %arg1[%c0_8, %c1, %c0_9, %c0_10] : memref<2x3x16x72xbf16, #tpu.memory_space<vmem>>, vector<1x1x16x72xbf16>
    %8 = vector.shape_cast %7 : vector<1x1x16x72xbf16> to vector<16x72xbf16>
    %c1_11 = arith.constant 1 : index
    %c0_12 = arith.constant 0 : index
    %c0_13 = arith.constant 0 : index
    %9 = vector.load %arg2[%c1_11, %c0_12, %c0_13] : memref<3x72x128xbf16, #tpu.memory_space<vmem>>, vector<1x72x128xbf16>
    %10 = vector.shape_cast %9 : vector<1x72x128xbf16> to vector<72x128xbf16>
    %cst_14 = arith.constant dense<0.000000e+00> : vector<16x128xf32>
    %11 = tpu.matmul %8, %10, %cst_14 {dimension_numbers = #tpu.dot_dimension_numbers<[1], [0], [0], [1], [0, 0, 1, 1], [], []>} : vector<16x72xbf16>, vector<72x128xbf16>, vector<16x128xf32> -> vector<16x128xf32>
    %12 = arith.addf %6, %11 : vector<16x128xf32>
    %c0_15 = arith.constant 0 : index
    %c2 = arith.constant 2 : index
    %c0_16 = arith.constant 0 : index
    %c0_17 = arith.constant 0 : index
    %13 = vector.load %arg1[%c0_15, %c2, %c0_16, %c0_17] : memref<2x3x16x72xbf16, #tpu.memory_space<vmem>>, vector<1x1x16x72xbf16>
    %14 = vector.shape_cast %13 : vector<1x1x16x72xbf16> to vector<16x72xbf16>
    %c2_18 = arith.constant 2 : index
    %c0_19 = arith.constant 0 : index
    %c0_20 = arith.constant 0 : index
    %15 = vector.load %arg2[%c2_18, %c0_19, %c0_20] : memref<3x72x128xbf16, #tpu.memory_space<vmem>>, vector<1x72x128xbf16>
    %16 = vector.shape_cast %15 : vector<1x72x128xbf16> to vector<72x128xbf16>
    %cst_21 = arith.constant dense<0.000000e+00> : vector<16x128xf32>
    %17 = tpu.matmul %14, %16, %cst_21 {dimension_numbers = #tpu.dot_dimension_numbers<[1], [0], [0], [1], [0, 0, 1, 1], [], []>} : vector<16x72xbf16>, vector<72x128xbf16>, vector<16x128xf32> -> vector<16x128xf32>
    %18 = arith.addf %12, %17 : vector<16x128xf32>
    %19 = vector.broadcast %1 : vector<1x128xf32> to vector<16x128xf32>
    %20 = arith.addf %18, %19 : vector<16x128xf32>
    %cst_22 = arith.constant 0.166666672 : f32
    %21 = vector.broadcast %cst_22 : f32 to vector<16x128xf32>
    %22 = arith.mulf %20, %21 : vector<16x128xf32>
    %cst_23 = arith.constant 5.000000e-01 : f32
    %23 = vector.broadcast %cst_23 : f32 to vector<16x128xf32>
    %24 = arith.addf %22, %23 : vector<16x128xf32>
    %cst_24 = arith.constant 0.000000e+00 : f32
    %cst_25 = arith.constant 1.000000e+00 : f32
    %25 = vector.broadcast %cst_24 : f32 to vector<16x128xf32>
    %26 = arith.maximumf %25, %24 : vector<16x128xf32>
    %27 = vector.broadcast %cst_25 : f32 to vector<16x128xf32>
    %28 = arith.minimumf %27, %26 : vector<16x128xf32>
    %29 = arith.truncf %28 : vector<16x128xf32> to vector<16x128xbf16>
    %c0_26 = arith.constant 0 : index
    %c0_27 = arith.constant 0 : index
    %c0_28 = arith.constant 0 : index
    %30 = vector.load %arg4[%c0_26, %c0_27, %c0_28] : memref<2x16x128xbf16, #tpu.memory_space<vmem>>, vector<1x16x128xbf16>
    %31 = vector.shape_cast %30 : vector<1x16x128xbf16> to vector<16x128xbf16>
    %32 = vector.shape_cast %29 : vector<16x128xbf16> to vector<1x16x128xbf16>
    tpu.vector_store %arg4[%c0_26, %c0_27, %c0_28], %32 {strides = array<i32>} : memref<2x16x128xbf16, #tpu.memory_space<vmem>>, vector<1x16x128xbf16>,
    %c1_29 = arith.constant 1 : index
    %c0_30 = arith.constant 0 : index
    %c0_31 = arith.constant 0 : index
    %c0_32 = arith.constant 0 : index
    %33 = vector.load %arg1[%c1_29, %c0_30, %c0_31, %c0_32] : memref<2x3x16x72xbf16, #tpu.memory_space<vmem>>, vector<1x1x16x72xbf16>
    %34 = vector.shape_cast %33 : vector<1x1x16x72xbf16> to vector<16x72xbf16>
    %c0_33 = arith.constant 0 : index
    %c0_34 = arith.constant 0 : index
    %c0_35 = arith.constant 0 : index
    %35 = vector.load %arg2[%c0_33, %c0_34, %c0_35] : memref<3x72x128xbf16, #tpu.memory_space<vmem>>, vector<1x72x128xbf16>
    %36 = vector.shape_cast %35 : vector<1x72x128xbf16> to vector<72x128xbf16>
    %cst_36 = arith.constant dense<0.000000e+00> : vector<16x128xf32>
    %37 = tpu.matmul %34, %36, %cst_36 {dimension_numbers = #tpu.dot_dimension_numbers<[1], [0], [0], [1], [0, 0, 1, 1], [], []>} : vector<16x72xbf16>, vector<72x128xbf16>, vector<16x128xf32> -> vector<16x128xf32>
    %c1_37 = arith.constant 1 : index
    %c1_38 = arith.constant 1 : index
    %c0_39 = arith.constant 0 : index
    %c0_40 = arith.constant 0 : index
    %38 = vector.load %arg1[%c1_37, %c1_38, %c0_39, %c0_40] : memref<2x3x16x72xbf16, #tpu.memory_space<vmem>>, vector<1x1x16x72xbf16>
    %39 = vector.shape_cast %38 : vector<1x1x16x72xbf16> to vector<16x72xbf16>
    %c1_41 = arith.constant 1 : index
    %c0_42 = arith.constant 0 : index
    %c0_43 = arith.constant 0 : index
    %40 = vector.load %arg2[%c1_41, %c0_42, %c0_43] : memref<3x72x128xbf16, #tpu.memory_space<vmem>>, vector<1x72x128xbf16>
    %41 = vector.shape_cast %40 : vector<1x72x128xbf16> to vector<72x128xbf16>
    %cst_44 = arith.constant dense<0.000000e+00> : vector<16x128xf32>
    %42 = tpu.matmul %39, %41, %cst_44 {dimension_numbers = #tpu.dot_dimension_numbers<[1], [0], [0], [1], [0, 0, 1, 1], [], []>} : vector<16x72xbf16>, vector<72x128xbf16>, vector<16x128xf32> -> vector<16x128xf32>
    %43 = arith.addf %37, %42 : vector<16x128xf32>
    %c1_45 = arith.constant 1 : index
    %c2_46 = arith.constant 2 : index
    %c0_47 = arith.constant 0 : index
    %c0_48 = arith.constant 0 : index
    %44 = vector.load %arg1[%c1_45, %c2_46, %c0_47, %c0_48] : memref<2x3x16x72xbf16, #tpu.memory_space<vmem>>, vector<1x1x16x72xbf16>
    %45 = vector.shape_cast %44 : vector<1x1x16x72xbf16> to vector<16x72xbf16>
    %c2_49 = arith.constant 2 : index
    %c0_50 = arith.constant 0 : index
    %c0_51 = arith.constant 0 : index
    %46 = vector.load %arg2[%c2_49, %c0_50, %c0_51] : memref<3x72x128xbf16, #tpu.memory_space<vmem>>, vector<1x72x128xbf16>
    %47 = vector.shape_cast %46 : vector<1x72x128xbf16> to vector<72x128xbf16>
    %cst_52 = arith.constant dense<0.000000e+00> : vector<16x128xf32>
    %48 = tpu.matmul %45, %47, %cst_52 {dimension_numbers = #tpu.dot_dimension_numbers<[1], [0], [0], [1], [0, 0, 1, 1], [], []>} : vector<16x72xbf16>, vector<72x128xbf16>, vector<16x128xf32> -> vector<16x128xf32>
    %49 = arith.addf %43, %48 : vector<16x128xf32>
    %50 = vector.broadcast %1 : vector<1x128xf32> to vector<16x128xf32>
    %51 = arith.addf %49, %50 : vector<16x128xf32>
    %cst_53 = arith.constant 0.166666672 : f32
    %52 = vector.broadcast %cst_53 : f32 to vector<16x128xf32>
    %53 = arith.mulf %51, %52 : vector<16x128xf32>
    %cst_54 = arith.constant 5.000000e-01 : f32
    %54 = vector.broadcast %cst_54 : f32 to vector<16x128xf32>
    %55 = arith.addf %53, %54 : vector<16x128xf32>
    %cst_55 = arith.constant 0.000000e+00 : f32
    %cst_56 = arith.constant 1.000000e+00 : f32
    %56 = vector.broadcast %cst_55 : f32 to vector<16x128xf32>
    %57 = arith.maximumf %56, %55 : vector<16x128xf32>
    %58 = vector.broadcast %cst_56 : f32 to vector<16x128xf32>
    %59 = arith.minimumf %58, %57 : vector<16x128xf32>
    %60 = arith.truncf %59 : vector<16x128xf32> to vector<16x128xbf16>
    %c1_57 = arith.constant 1 : index
    %c0_58 = arith.constant 0 : index
    %c0_59 = arith.constant 0 : index
    %61 = vector.load %arg4[%c1_57, %c0_58, %c0_59] : memref<2x16x128xbf16, #tpu.memory_space<vmem>>, vector<1x16x128xbf16>
    %62 = vector.shape_cast %61 : vector<1x16x128xbf16> to vector<16x128xbf16>
    %63 = vector.shape_cast %60 : vector<16x128xbf16> to vector<1x16x128xbf16>
    tpu.vector_store %arg4[%c1_57, %c0_58, %c0_59], %63 {strides = array<i32>} : memref<2x16x128xbf16, #tpu.memory_space<vmem>>, vector<1x16x128xbf16>,
    return
  }
  func.func @transform_0(%arg0: i32) -> (i32, i32, i32, i32) {
    %c0_i32 = arith.constant 0 : i32
    %c0_i32_0 = arith.constant 0 : i32
    %c0_i32_1 = arith.constant 0 : i32
    %c0_i32_2 = arith.constant 0 : i32
    return %arg0, %c0_i32, %c0_i32_0, %c0_i32_1 : i32, i32, i32, i32
  }
  func.func @transform_1(%arg0: i32) -> (i32, i32, i32) {
    %c0_i32 = arith.constant 0 : i32
    %c0_i32_0 = arith.constant 0 : i32
    %c0_i32_1 = arith.constant 0 : i32
    %c0_i32_2 = arith.constant 0 : i32
    return %c0_i32, %c0_i32_0, %c0_i32_1 : i32, i32, i32
  }
  func.func @transform_2(%arg0: i32) -> (i32, i32) {
    %c0_i32 = arith.constant 0 : i32
    %c0_i32_0 = arith.constant 0 : i32
    %c0_i32_1 = arith.constant 0 : i32
    return %c0_i32, %c0_i32_0 : i32, i32
  }
  func.func @transform_3(%arg0: i32) -> (i32, i32, i32) {
    %c0_i32 = arith.constant 0 : i32
    %c0_i32_0 = arith.constant 0 : i32
    %c0_i32_1 = arith.constant 0 : i32
    return %arg0, %c0_i32, %c0_i32_0 : i32, i32, i32
  }
}

</mosaic_0001>

<bundles_post_ra>
// kernel: tpu_custom_call.1
= control target key start
LH: loop header
LB: loop body
LE: loop exit
PB: predicated region body
PF: predicated region fallthrough
CT: control target
= control target key end

     0   :  { %8 = vsyncpa [#allocation3], 0  ;;  %s1053_s0 = inlined_call_operand.hbm [shape: bf16[2,3,16,72], index: 0, kind: input, shape index: {}]   ;;  %s1054_s1 = inlined_call_operand.hbm [shape: bf16[3,72,128], index: 1, kind: input, shape index: {}]   ;;  %s1055_s2 = inlined_call_operand.vmem [shape: bf16[1,128], index: 2, kind: input, shape index: {}]   ;;  %s1056_s3 = inlined_call_operand.hbm [shape: bf16[2,16,128], index: 3, kind: output, shape index: {}]  }
   0x1   :  { %9 = vsyncpa [#allocation6], 0 }
   0x2   :  { %10 = vsyncpa [#allocation4], 0  ;;  %s951_s12 = smov [#allocation2]  }
   0x3   :  { %s16_s13 = sshll.u32 %s951_s12, 4  ;;  %s17_s13 = int_to_ptr.vmem [resolvable:$true] %s16_s13 }
   0x4   :  { %s893_s14 = scalar_lea.vmem %s17_s13, 768  ;;  %p898_p1 = scmp.lt.s32.totalorder %s17_s13, %s17_s13 }
   0x5   :  { %p894_p0 = scmp.ne.s32.totalorder %s17_s13, %s893_s14  ;;  %p899_p2 = scmp.lt.s32.totalorder %s893_s14, %s893_s14 }
   0x7   :  { %p900_p3 = por %p899_p2, %p898_p1 }
   0x9   :  { %p901_p4 = pnand %p900_p3, %p894_p0 }
   0xb   :  { %904 = shalt.err (!%p901_p4)
}
   0xc   :  { %s952_s15 = smov 64   ;;  %s953_s16 = smov 4  }
   0xd   :  { %22 = dma.hbm_to_vmem [thread:$0]  %s1053_s0, 768, %s17_s13, [#allocation3], %s952_s15, %s952_s15, %s953_s16  }
   0xe   :  { %s954_s19 = smov [#allocation5]  }
   0xf   :  { %s28_s20 = sshll.u32 %s954_s19, 4  ;;  %s29_s20 = int_to_ptr.vmem [resolvable:$true] %s28_s20 }
  0x10   :  { %s913_s21 = scalar_lea.vmem %s29_s20, 1728  ;;  %p918_p6 = scmp.lt.s32.totalorder %s29_s20, %s29_s20 }
  0x11   :  { %p914_p5 = scmp.ne.s32.totalorder %s29_s20, %s913_s21  ;;  %p919_p7 = scmp.lt.s32.totalorder %s913_s21, %s913_s21 }
  0x13   :  { %p920_p8 = por %p919_p7, %p918_p6 }
  0x15   :  { %p921_p9 = pnand %p920_p8, %p914_p5 }
  0x17   :  { %924 = shalt.err (!%p921_p9)
}
  0x18   :  { %34 = dma.hbm_to_vmem [thread:$0]  %s1054_s1, 1728, %s29_s20, [#allocation6], %s952_s15, %s952_s15, %s953_s16  }
  0x19   :  { %945 = dma.done.wait [#allocation3], 768  }
  0x1a   :  { %946 = vsyncadd [#allocation3], 4294966528 }
  0x1b   :  { %947 = dma.done.wait [#allocation6], 1728  }
  0x1c   :  { %948 = vsyncadd [#allocation6], 4294965568  ;;  %v955_v0 = vmov 0.0   ;;  %vm956_vm0 = vmmov 0   ;;  %vm106_vm1 = vcmask 1043456   ;;  %v851_v5 = vld [vmem:[#allocation5 + $0x3c] sm:$0xff]   ;;  %v324_v51 = vlaneseq }
  0x1d   :  { %758 = vmatprep.subr.bf16.mxu0 %v955_v0  ;;  %772 = vmatprep.subr.bf16.mxu1 %v955_v0  ;;  %v849_v1 = vld [vmem:[#allocation5 + $0x44] ss:$0 sps:$4 sm:$0xff]   ;;  %v850_v2 = vld [vmem:[#allocation5 + $0x20] ss:$0 sps:$4 sm:$0xff]   ;;  %v852_v6 = vld [vmem:[#allocation5 + $0x18] sm:$0xff]   ;;  %vm102_vm2 = vcmask 588800  }
  0x1e   :  { %768 = vmatprep.mubr.msk.bf16.mxu0 %vm956_vm0, %v955_v0  ;;  %782 = vmatprep.mubr.msk.bf16.mxu1 %vm956_vm0, %v955_v0  ;;  %v108_v3 = vsel %vm106_vm1, %v849_v1, 0  ;;  %v187_v4 = vsel %vm106_vm1, %v850_v2, 0  ;;  %v853_v7 = vld [vmem:[#allocation5 + $0x34] sm:$0xff]   ;;  %v855_v9 = vld [vmem:[#allocation5 + $0x2c] sm:$0xff]   ;;  %v857_v11 = vld [vmem:[#allocation5 + $0x24] sm:$0xff]   ;;  %v325_v52 = vshrl.u32 %v324_v51, 7 }
  0x1f   :  { %759 = vmatpush3.bf16.msra.mxu0 %v108_v3  ;;  %773 = vmatpush3.bf16.msra.mxu1 %v187_v4  ;;  %v854_v8 = vld [vmem:[#allocation5 + $0x10] sm:$0xff]   ;;  %v856_v10 = vld [vmem:[#allocation5 + $0x8] sm:$0xff]   ;;  %v858_v12 = vld [vmem:[#allocation5] sm:$0xff]  }
  0x20   :  { %760 = vmatprep.subr.bf16.mxu0 %v955_v0  ;;  %774 = vmatprep.subr.bf16.mxu1 %v955_v0  ;;  %v861_v13 = vld [vmem:[#allocation5 + $0x68] ss:$0 sps:$4 sm:$0xff]   ;;  %v862_v14 = vld [vmem:[#allocation5 + $0x44] ss:$0 sps:$4 sm:$0xff]   ;;  %v859_v15 = vld [vmem:[#allocation2 + $0x8] sm:$0xff]   ;;  %v326_v55 = vsub.s32 0, %v325_v52 }
  0x21   :  { %v860_v16 = vld [vmem:[#allocation2] sm:$0xff]   ;;  %v279_v17 = vsel %vm106_vm1, %v861_v13, 0  ;;  %v408_v18 = vsel %vm106_vm1, %v862_v14, 0  ;;  %v863_v19 = vld [vmem:[#allocation5 + $0x60] sm:$0xff]   ;;  %v865_v21 = vld [vmem:[#allocation5 + $0x58] sm:$0xff]  }
  0x22   :  { %v864_v20 = vld [vmem:[#allocation5 + $0x3c] sm:$0xff]   ;;  %v866_v22 = vld [vmem:[#allocation5 + $0x34] sm:$0xff]   ;;  %v868_v24 = vld [vmem:[#allocation5 + $0x2c] sm:$0xff]  }
  0x23   :  { %761 = vmatpush3.bf16.msra.mxu0 %v851_v5  ;;  %775 = vmatpush3.bf16.msra.mxu1 %v852_v6  ;;  %v867_v23 = vld [vmem:[#allocation5 + $0x50] sm:$0xff]   ;;  %v869_v25 = vld [vmem:[#allocation5 + $0x48] sm:$0xff]   ;;  %v873_v27 = vld [vmem:[#allocation5 + $0x20] ss:$0 sps:$4 sm:$0xff]  }
  0x24   :  { %762 = vmatprep.subr.bf16.mxu0 %v955_v0  ;;  %776 = vmatprep.subr.bf16.mxu1 %v955_v0  ;;  %v870_v26 = vld [vmem:[#allocation5 + $0x24] sm:$0xff]   ;;  %v872_v30 = vld [vmem:[#allocation2 + $0x20] sm:$0xff]   ;;  %v487_v31 = vsel %vm106_vm1, %v873_v27, 0  ;;  %v875_v33 = vld [vmem:[#allocation5 + $0x18] sm:$0xff]  }
  0x25   :  { %v874_v28 = vld [vmem:[#allocation5 + $0x68] ss:$0 sps:$4 sm:$0xff]   ;;  %v871_v29 = vld [vmem:[#allocation2 + $0x10] sm:$0xff]   ;;  %v877_v35 = vld [vmem:[#allocation5 + $0x10] sm:$0xff]  }
  0x26   :  { %v578_v32 = vsel %vm106_vm1, %v874_v28, 0  ;;  %v876_v34 = vld [vmem:[#allocation5 + $0x60] sm:$0xff]   ;;  %v878_v36 = vld [vmem:[#allocation5 + $0x58] sm:$0xff]   ;;  %v879_v37 = vld [vmem:[#allocation5 + $0x8] sm:$0xff]  }
  0x27   :  { %763 = vmatpush3.bf16.msra.mxu0 %v853_v7  ;;  %777 = vmatpush3.bf16.msra.mxu1 %v854_v8  ;;  %v880_v38 = vld [vmem:[#allocation5 + $0x50] sm:$0xff]   ;;  %v881_v39 = vld [vmem:[#allocation5] sm:$0xff]   ;;  %v882_v40 = vld [vmem:[#allocation5 + $0x48] sm:$0xff]  }
  0x28   :  { %764 = vmatprep.subr.bf16.mxu0 %v955_v0  ;;  %778 = vmatprep.subr.bf16.mxu1 %v955_v0  ;;  %v883_v41 = vld [vmem:[#allocation2 + $0x18] sm:$0xff]   ;;  %v884_v42 = vld [vmem:[#allocation2 + $0x28] sm:$0xff]   ;;  %v44_v53 = vld [vmem:[%s1055_s2] sm:$0x1]  ;;  %s957_s2 = smov [#allocation7]  }
  0x29   :  { %v45_v54 = vunpack.c.l.bf16 %v44_v53  ;;  %s649_s24 = sshll.u32 %s957_s2, 4  ;;  %s650_s24 = int_to_ptr.vmem [resolvable:$true] %s649_s24 }
  0x2a   :  { %s925_s25 = scalar_lea.vmem %s650_s24, 256  ;;  %p930_p11 = scmp.lt.s32.totalorder %s650_s24, %s650_s24 }
  0x2b   :  { %765 = vmatpush3.bf16.msra.mxu0 %v855_v9  ;;  %779 = vmatpush3.bf16.msra.mxu1 %v856_v10  ;;  %v327_v57 = vrot.slane %v45_v54, %v326_v55  ;;  %p926_p10 = scmp.ne.s32.totalorder %s650_s24, %s925_s25  ;;  %p931_p12 = scmp.lt.s32.totalorder %s925_s25, %s925_s25 }
  0x2c   :  { %766 = vmatprep.subr.bf16.mxu0 %v955_v0  ;;  %780 = vmatprep.subr.bf16.mxu1 %v955_v0 }
  0x2d   :  { %p932_p13 = por %p931_p12, %p930_p11 }
  0x2f   :  { %767 = vmatpush3.bf16.msra.mxu0 %v857_v11  ;;  %781 = vmatpush3.bf16.msra.mxu1 %v858_v12  ;;  %p933_p0 = pnand %p932_p13, %p926_p10 }
  0x30   :  { %786 = vmatprep.subr.bf16.mxu0 %v955_v0  ;;  %800 = vmatprep.subr.bf16.mxu1 %v955_v0 }
  0x32   :  { %769 = vmatmul.mubr.msk.bf16.vlgmr.msra.gmra.mxu0 %vm102_vm2, %v859_v15  ;;  %783 = vmatmul.mubr.msk.bf16.vlgmr.msra.gmra.mxu1 %vm102_vm2, %v860_v16 }
  0x33   :  { %787 = vmatpush3.bf16.msra.mxu0 %v279_v17  ;;  %801 = vmatpush3.bf16.msra.mxu1 %v408_v18 }
  0x34   :  { %788 = vmatprep.subr.bf16.mxu0 %v955_v0  ;;  %802 = vmatprep.subr.bf16.mxu1 %v955_v0 }
  0x35   :  { %796 = vmatprep.mubr.msk.bf16.mxu0 %vm956_vm0, %v955_v0  ;;  %810 = vmatprep.mubr.msk.bf16.mxu1 %vm956_vm0, %v955_v0 }
  0x37   :  { %789 = vmatpush3.bf16.msra.mxu0 %v863_v19  ;;  %803 = vmatpush3.bf16.msra.mxu1 %v864_v20 }
  0x38   :  { %790 = vmatprep.subr.bf16.mxu0 %v955_v0  ;;  %804 = vmatprep.subr.bf16.mxu1 %v955_v0 }
  0x3b   :  { %791 = vmatpush3.bf16.msra.mxu0 %v865_v21  ;;  %805 = vmatpush3.bf16.msra.mxu1 %v866_v22 }
  0x3c   :  { %792 = vmatprep.subr.bf16.mxu0 %v955_v0  ;;  %806 = vmatprep.subr.bf16.mxu1 %v955_v0 }
  0x3f   :  { %793 = vmatpush3.bf16.msra.mxu0 %v867_v23  ;;  %807 = vmatpush3.bf16.msra.mxu1 %v868_v24 }
  0x40   :  { %794 = vmatprep.subr.bf16.mxu0 %v955_v0  ;;  %808 = vmatprep.subr.bf16.mxu1 %v955_v0 }
  0x43   :  { %795 = vmatpush3.bf16.msra.mxu0 %v869_v25  ;;  %809 = vmatpush3.bf16.msra.mxu1 %v870_v26 }
  0x44   :  { %814 = vmatprep.subr.bf16.mxu0 %v955_v0  ;;  %828 = vmatprep.subr.bf16.mxu1 %v955_v0 }
  0x46   :  { %797 = vmatmul.mubr.msk.bf16.vlgmr.msra.gmra.mxu0 %vm102_vm2, %v871_v29  ;;  %811 = vmatmul.mubr.msk.bf16.vlgmr.msra.gmra.mxu1 %vm102_vm2, %v872_v30 }
  0x47   :  { %815 = vmatpush3.bf16.msra.mxu0 %v487_v31  ;;  %829 = vmatpush3.bf16.msra.mxu1 %v578_v32 }
  0x48   :  { %816 = vmatprep.subr.bf16.mxu0 %v955_v0  ;;  %830 = vmatprep.subr.bf16.mxu1 %v955_v0 }
  0x49   :  { %824 = vmatprep.mubr.msk.bf16.mxu0 %vm956_vm0, %v955_v0  ;;  %838 = vmatprep.mubr.msk.bf16.mxu1 %vm956_vm0, %v955_v0 }
  0x4b   :  { %817 = vmatpush3.bf16.msra.mxu0 %v875_v33  ;;  %831 = vmatpush3.bf16.msra.mxu1 %v876_v34 }
  0x4c   :  { %818 = vmatprep.subr.bf16.mxu0 %v955_v0  ;;  %832 = vmatprep.subr.bf16.mxu1 %v955_v0 }
  0x4f   :  { %819 = vmatpush3.bf16.msra.mxu0 %v877_v35  ;;  %833 = vmatpush3.bf16.msra.mxu1 %v878_v36 }
  0x50   :  { %820 = vmatprep.subr.bf16.mxu0 %v955_v0  ;;  %834 = vmatprep.subr.bf16.mxu1 %v955_v0 }
  0x53   :  { %821 = vmatpush3.bf16.msra.mxu0 %v879_v37  ;;  %835 = vmatpush3.bf16.msra.mxu1 %v880_v38 }
  0x54   :  { %822 = vmatprep.subr.bf16.mxu0 %v955_v0  ;;  %836 = vmatprep.subr.bf16.mxu1 %v955_v0 }
  0x57   :  { %823 = vmatpush3.bf16.msra.mxu0 %v881_v39  ;;  %837 = vmatpush3.bf16.msra.mxu1 %v882_v40 }
  0x5a   :  { %825 = vmatmul.mubr.msk.bf16.vlgmr.msra.gmra.mxu0 %vm102_vm2, %v883_v41  ;;  %839 = vmatmul.mubr.msk.bf16.vlgmr.msra.gmra.mxu1 %vm102_vm2, %v884_v42 }
  0xf2   :  { %v144_v43 = vpop.f32.mrf.mxu0  ;;  %v223_v44 = vpop.f32.mrf.mxu1 }
  0xf3   :  { %v224_v56 = vadd.f32 %v223_v44, %v144_v43 }
  0xf4   :  { %v770_v45 = vpop.f32.mrf.mxu0  ;;  %v784_v46 = vpop.f32.mrf.mxu1 }
  0xf6   :  { %v147_v47 = vpop.f32.mrf.mxu0  ;;  %v226_v48 = vpop.f32.mrf.mxu1 }
  0xf7   :  { %v227_v62 = vadd.f32 %v226_v48, %v147_v47 }
  0xf8   :  { %v771_v49 = vpop.f32.mrf.mxu0  ;;  %v785_v50 = vpop.f32.mrf.mxu1 }
 0x106   :  { %v315_v58 = vpop.f32.mrf.mxu0  ;;  %v444_v60 = vpop.f32.mrf.mxu1 }
 0x107   :  { %v322_v59 = vadd.f32 %v315_v58, %v224_v56 }
 0x108   :  { %v798_v61 = vpop.f32.mrf.mxu0  ;;  %v812_v0 = vpop.f32.mrf.mxu1 }
 0x109   :  { %v328_v63 = vadd.f32 %v327_v57, %v322_v59 }
 0x10a   :  { %v318_v1 = vpop.f32.mrf.mxu0  ;;  %v447_v4 = vpop.f32.mrf.mxu1 }
 0x10b   :  { %v330_v2 = vmul.f32 0.16666667, %v328_v63  ;;  %v323_v3 = vadd.f32 %v318_v1, %v227_v62 }
 0x10c   :  { %v799_v5 = vpop.f32.mrf.mxu0  ;;  %v813_v8 = vpop.f32.mrf.mxu1 }
 0x10d   :  { %v332_v6 = vadd.f32 0.5, %v330_v2  ;;  %v329_v7 = vadd.f32 %v327_v57, %v323_v3 }
 0x10f   :  { %v331_v9 = vmul.f32 0.16666667, %v329_v7  ;;  %v334_v10 = vmax.f32 %v332_v6, 0.0 }
 0x111   :  { %v333_v11 = vadd.f32 0.5, %v331_v9  ;;  %v336_v13 = vmin.f32 %v334_v10, 1.0 }
 0x113   :  { %v335_v12 = vmax.f32 %v333_v11, 0.0 }
 0x115   :  { %v337_v14 = vmin.f32 %v335_v12, 1.0 }
 0x117   :  { %v715_v15 = vpack.c.bf16 %v337_v14, %v336_v13 }
 0x119   :  { %716 = vst [vmem:[#allocation7] sm:$0xff] %v715_v15  }
 0x11a   :  { %v523_v16 = vpop.f32.mrf.mxu0  ;;  %v614_v18 = vpop.f32.mrf.mxu1 }
 0x11b   :  { %v524_v17 = vadd.f32 %v523_v16, %v444_v60 }
 0x11c   :  { %v826_v19 = vpop.f32.mrf.mxu0  ;;  %v840_v21 = vpop.f32.mrf.mxu1 }
 0x11d   :  { %v621_v20 = vadd.f32 %v614_v18, %v524_v17 }
 0x11e   :  { %v526_v22 = vpop.f32.mrf.mxu0  ;;  %v617_v25 = vpop.f32.mrf.mxu1 }
 0x11f   :  { %v623_v23 = vadd.f32 %v621_v20, %v327_v57  ;;  %v527_v24 = vadd.f32 %v526_v22, %v447_v4 }
 0x120   :  { %v827_v26 = vpop.f32.mrf.mxu0  ;;  %v841_v29 = vpop.f32.mrf.mxu1 }
 0x121   :  { %v625_v27 = vmul.f32 0.16666667, %v623_v23  ;;  %v622_v28 = vadd.f32 %v617_v25, %v527_v24 }
 0x123   :  { %v627_v30 = vadd.f32 0.5, %v625_v27  ;;  %v624_v31 = vadd.f32 %v622_v28, %v327_v57 }
 0x125   :  { %v626_v32 = vmul.f32 0.16666667, %v624_v31  ;;  %v629_v33 = vmax.f32 %v627_v30, 0.0 }
 0x127   :  { %v628_v34 = vadd.f32 0.5, %v626_v32  ;;  %v631_v36 = vmin.f32 %v629_v33, 1.0 }
 0x129   :  { %v630_v35 = vmax.f32 %v628_v34, 0.0 }
 0x12b   :  { %v632_v37 = vmin.f32 %v630_v35, 1.0 }
 0x12d   :  { %v720_v38 = vpack.c.bf16 %v632_v37, %v631_v36 }
 0x12f   :  { %721 = vst [vmem:[#allocation7 + $0x8] sm:$0xff] %v720_v38  }
 0x130   :  { %936 = shalt.err (!%p933_p0)
}
 0x131   :  { %655 = dma.vmem_to_hbm [thread:$0]  %s650_s24, 256, %s1056_s3, [#allocation4], %s952_s15, %s952_s15, %s953_s16  }
 0x132   :  { %949 = dma.done.wait [#allocation4], 256  }
 0x133   :  { %950 = vsyncadd [#allocation4], 4294967040 }
 0x134   :  { %659 = vsyncpa [#allocation3], 1 }
 0x135   :  { %660 = vsyncpa [#allocation6], 1 }
 0x136   :  { %661 = vsyncpa [#allocation4], 1 }

</bundles_post_ra>
